<compile_context>
chip_gen: v7x
topology: tpu7x:2x2x1
jax: 0.10.0
libtpu: 0.0.40
codegen_flags: <defaults>
</compile_context>

<pallas_src>
import functools

import jax
import jax.numpy as jnp
from jax.experimental import pallas as pl
from jax.experimental.pallas import tpu as pltpu

_PADDED_VOCAB = 128  # lane-width fused vocab (13 + 1 + 4 + 1 + 52 = 71 real rows)


def _round_up(x, m):
    return ((x + m - 1) // m) * m


def _card_group_emb_kernel(r_ref, s_ref, c_ref, w_ref, out_ref, *,
                           suit_off, card_off):
    """r/s/c_ref: (TILE_BS, n_cards) int32 raw indices (-1 == no card).
    w_ref:      (_PADDED_VOCAB, dim) float32 fused table (zero rows at
                suit_off-1 / card_off-1 absorb the -1 indices).
    out_ref:    (TILE_BS, dim) float32."""
    r = r_ref[...]
    s = s_ref[...]
    c = c_ref[...]
    tile_bs, n_cards = r.shape
    vocab = w_ref.shape[0]  # 128

    # Hoisted shifted iotas: comparing `iota - off == idx` == `iota == idx+off`.
    iota_r = jax.lax.broadcasted_iota(jnp.int32, (tile_bs, vocab), 1)
    iota_s = iota_r - suit_off
    iota_c = iota_r - card_off

    counts = jnp.zeros((tile_bs, vocab), jnp.float32)
    # n_cards is tiny (2..5): static unrolled loop, 2-D ops only.
    for j in range(n_cards):
        rj = r[:, j:j + 1]
        sj = s[:, j:j + 1]
        cj = c[:, j:j + 1]
        # rank/suit/card hit disjoint lane regions -> OR-combine, one add.
        hit = (iota_r == rj) | (iota_s == sj) | (iota_c == cj)
        counts = counts + hit.astype(jnp.float32)

    out_ref[...] = jnp.dot(counts, w_ref[...],
                           preferred_element_type=jnp.float32)


def card_group_emb(ranks, suits, cards, rank_w, suit_w, card_w, *,
                   tile_bs=None):
    bs, n_cards = cards.shape
    n_ranks, dim = rank_w.shape
    n_suits = suit_w.shape[0]
    n_card_vocab = card_w.shape[0]
    real_rows = n_ranks + 1 + n_suits + 1 + n_card_vocab
    assert real_rows <= _PADDED_VOCAB, "fused vocab must fit one 128-lane tile"

    suit_off = n_ranks + 1
    card_off = n_ranks + 1 + n_suits + 1

    # Fused table: [rank ; 0 ; suit ; 0 ; card ; 0-pad].  (Built once per call
    # here; in a real model this is a constant w.r.t. the batch.)
    zero_row = jnp.zeros((1, dim), jnp.float32)
    tail_pad = jnp.zeros((_PADDED_VOCAB - real_rows, dim), jnp.float32)
    fused_w = jnp.concatenate(
        [rank_w.astype(jnp.float32), zero_row,
         suit_w.astype(jnp.float32), zero_row,
         card_w.astype(jnp.float32), tail_pad], axis=0)

    r = ranks.astype(jnp.int32)
    s = suits.astype(jnp.int32)
    c = cards.astype(jnp.int32)

    # Batch tiling: single tile for small batches, cap at 512 rows otherwise
    # (VMEM-safe on v7x); pad bs to a tile multiple with -1 (contributes 0).
    if tile_bs is None:
        tile_bs = min(512, _round_up(bs, 8))
    tile_bs = max(8, _round_up(tile_bs, 8))
    padded_bs = _round_up(bs, tile_bs)
    if padded_bs != bs:
        pad_cfg = ((0, padded_bs - bs), (0, 0))
        r = jnp.pad(r, pad_cfg, constant_values=-1)
        s = jnp.pad(s, pad_cfg, constant_values=-1)
        c = jnp.pad(c, pad_cfg, constant_values=-1)
    grid = (padded_bs // tile_bs,)

    cost = pl.CostEstimate(
        flops=2 * padded_bs * _PADDED_VOCAB * dim,
        transcendentals=0,
        bytes_accessed=(3 * padded_bs * n_cards * 4      # index inputs
                        + padded_bs * dim * 4            # output
                        + _PADDED_VOCAB * dim * 4))      # fused table

    idx_spec = pl.BlockSpec((tile_bs, n_cards), lambda i: (i, 0))
    kernel = functools.partial(_card_group_emb_kernel,
                               suit_off=suit_off, card_off=card_off)

    out = pl.pallas_call(
        kernel,
        out_shape=jax.ShapeDtypeStruct((padded_bs, dim), jnp.float32),
        grid_spec=pltpu.PrefetchScalarGridSpec(
            num_scalar_prefetch=0,
            grid=grid,
            in_specs=[
                idx_spec, idx_spec, idx_spec,
                pl.BlockSpec((_PADDED_VOCAB, dim), lambda i: (0, 0)),
            ],
            out_specs=pl.BlockSpec((tile_bs, dim), lambda i: (i, 0)),
        ),
        compiler_params=pltpu.CompilerParams(
            dimension_semantics=("parallel",)),
        cost_estimate=cost,
    )(r, s, c, fused_w)

    return out[:bs]
    # TODO(synk): for a fully lane-dense output (dim >= 128) fuse the board +
    # hole-card groups of PokerRL into one kernel call / pad dim to 128.


def card_group_emb_ref(ranks, suits, cards, rank_w, suit_w, card_w):
    """Pure-JAX reference mirroring the PyTorch forward."""
    bs, n_cards = cards.shape
    r = ranks.reshape(-1)
    s = suits.reshape(-1)
    c = cards.reshape(-1)
    valid_r = (r >= 0).astype(jnp.float32)[:, None]
    valid_s = (s >= 0).astype(jnp.float32)[:, None]
    valid_c = (c >= 0).astype(jnp.float32)[:, None]
    embs = rank_w[jnp.maximum(r, 0)] * valid_r
    embs = embs + card_w[jnp.maximum(c, 0)] * valid_c + suit_w[jnp.maximum(s, 0)] * valid_s
    return embs.reshape(bs, n_cards, -1).sum(axis=1)


def _make_inputs(key, bs, n_cards, n_ranks, n_suits, dim):
    k_card, k_rank_w, k_suit_w, k_cardw = jax.random.split(key, 4)
    # Card ids in [-1, 52); -1 == missing card.
    cards = jax.random.randint(k_card, (bs, n_cards), minval=-1,
                               maxval=n_ranks * n_suits, dtype=jnp.int32)
    valid = cards >= 0
    ranks = jnp.where(valid, cards // n_suits, -1).astype(jnp.int32)
    suits = jnp.where(valid, cards % n_suits, -1).astype(jnp.int32)
    # Deterministic "nn.Embedding" weights (standard normal, like PyTorch init).
    rank_w = jax.random.normal(k_rank_w, (n_ranks, dim), dtype=jnp.float32)
    suit_w = jax.random.normal(k_suit_w, (n_suits, dim), dtype=jnp.float32)
    card_w = jax.random.normal(k_cardw, (n_ranks * n_suits, dim), dtype=jnp.float32)
    return ranks, suits, cards, rank_w, suit_w, card_w


if __name__ == "__main__":
    N_RANKS, N_SUITS, DIM = 13, 4, 32       # SUITS_MATTER = True
    key = jax.random.PRNGKey(0)

    # Case 1: tiny batch (e.g. the 5-card board group), single tile.
    BS, N_CARDS = 2, 5
    args = _make_inputs(key, BS, N_CARDS, N_RANKS, N_SUITS, DIM)
    out = jax.block_until_ready(card_group_emb(*args))
    ref = card_group_emb_ref(*args)
    assert out.shape == (BS, DIM)
    assert jnp.allclose(out, ref, atol=1e-5, rtol=1e-5), "mismatch vs reference (case 1)"

    # Case 2: batch that exercises the grid + tail padding (bs % tile != 0).
    BS2, N_CARDS2 = 20, 2                   # e.g. hole-card group
    args2 = _make_inputs(jax.random.PRNGKey(0), BS2, N_CARDS2, N_RANKS, N_SUITS, DIM)
    out2 = jax.block_until_ready(card_group_emb(*args2, tile_bs=8))
    ref2 = card_group_emb_ref(*args2)
    assert out2.shape == (BS2, DIM)
    assert jnp.allclose(out2, ref2, atol=1e-5, rtol=1e-5), "mismatch vs reference (case 2)"

    print("KERNEL_OK")
</pallas_src>

<mosaic_0001>
module attributes {stable_mosaic.version = 11 : i64} {
  func.func @_card_group_emb_kernel(%arg0: i32, %arg1: memref<8x5xi32, #tpu.memory_space<vmem>>, %arg2: memref<8x5xi32, #tpu.memory_space<vmem>>, %arg3: memref<8x5xi32, #tpu.memory_space<vmem>>, %arg4: memref<128x32xf32, #tpu.memory_space<vmem>>, %arg5: memref<8x32xf32, #tpu.memory_space<vmem>>) attributes {dimension_semantics = [#tpu.dimension_semantics<parallel>], iteration_bounds = array<i64: 1>, scalar_prefetch = 0 : i64, scratch_operands = 0 : i64, tpu.core_type = #tpu.core_type<tc>, window_params = [{transform_indices = @transform_0, window_bounds = array<i64: 8, 5>}, {transform_indices = @transform_1, window_bounds = array<i64: 8, 5>}, {transform_indices = @transform_2, window_bounds = array<i64: 8, 5>}, {pipeline_mode = #tpu.pipeline_mode<synchronous>, transform_indices = @transform_3, window_bounds = array<i64: 128, 32>}, {transform_indices = @transform_4, window_bounds = array<i64: 8, 32>}]} {
    %c0 = arith.constant 0 : index
    %c0_0 = arith.constant 0 : index
    %0 = vector.load %arg1[%c0, %c0_0] : memref<8x5xi32, #tpu.memory_space<vmem>>, vector<8x5xi32>
    %c0_1 = arith.constant 0 : index
    %c0_2 = arith.constant 0 : index
    %1 = vector.load %arg2[%c0_1, %c0_2] : memref<8x5xi32, #tpu.memory_space<vmem>>, vector<8x5xi32>
    %c0_3 = arith.constant 0 : index
    %c0_4 = arith.constant 0 : index
    %2 = vector.load %arg3[%c0_3, %c0_4] : memref<8x5xi32, #tpu.memory_space<vmem>>, vector<8x5xi32>
    %3 = tpu.iota {dimensions = array<i32: 1>} : vector<8x128xi32>
    %c14_i32 = arith.constant 14 : i32
    %4 = vector.broadcast %c14_i32 : i32 to vector<8x128xi32>
    %5 = arith.subi %3, %4 : vector<8x128xi32>
    %c19_i32 = arith.constant 19 : i32
    %6 = vector.broadcast %c19_i32 : i32 to vector<8x128xi32>
    %7 = arith.subi %3, %6 : vector<8x128xi32>
    %cst = arith.constant 0.000000e+00 : f32
    %8 = vector.broadcast %cst : f32 to vector<8x128xf32>
    %9 = vector.extract_strided_slice %0 {offsets = [0, 0], sizes = [8, 1], strides = [1, 1]} : vector<8x5xi32> to vector<8x1xi32>
    %10 = vector.extract_strided_slice %1 {offsets = [0, 0], sizes = [8, 1], strides = [1, 1]} : vector<8x5xi32> to vector<8x1xi32>
    %11 = vector.extract_strided_slice %2 {offsets = [0, 0], sizes = [8, 1], strides = [1, 1]} : vector<8x5xi32> to vector<8x1xi32>
    %12 = vector.broadcast %9 : vector<8x1xi32> to vector<8x128xi32>
    %13 = arith.cmpi eq, %3, %12 : vector<8x128xi32>
    %14 = vector.broadcast %10 : vector<8x1xi32> to vector<8x128xi32>
    %15 = arith.cmpi eq, %5, %14 : vector<8x128xi32>
    %16 = arith.ori %13, %15 : vector<8x128xi1>
    %17 = vector.broadcast %11 : vector<8x1xi32> to vector<8x128xi32>
    %18 = arith.cmpi eq, %7, %17 : vector<8x128xi32>
    %19 = arith.ori %16, %18 : vector<8x128xi1>
    %20 = arith.extui %19 : vector<8x128xi1> to vector<8x128xi32>
    %21 = arith.sitofp %20 : vector<8x128xi32> to vector<8x128xf32>
    %22 = arith.addf %8, %21 : vector<8x128xf32>
    %23 = vector.extract_strided_slice %0 {offsets = [0, 1], sizes = [8, 1], strides = [1, 1]} : vector<8x5xi32> to vector<8x1xi32>
    %24 = vector.extract_strided_slice %1 {offsets = [0, 1], sizes = [8, 1], strides = [1, 1]} : vector<8x5xi32> to vector<8x1xi32>
    %25 = vector.extract_strided_slice %2 {offsets = [0, 1], sizes = [8, 1], strides = [1, 1]} : vector<8x5xi32> to vector<8x1xi32>
    %26 = vector.broadcast %23 : vector<8x1xi32> to vector<8x128xi32>
    %27 = arith.cmpi eq, %3, %26 : vector<8x128xi32>
    %28 = vector.broadcast %24 : vector<8x1xi32> to vector<8x128xi32>
    %29 = arith.cmpi eq, %5, %28 : vector<8x128xi32>
    %30 = arith.ori %27, %29 : vector<8x128xi1>
    %31 = vector.broadcast %25 : vector<8x1xi32> to vector<8x128xi32>
    %32 = arith.cmpi eq, %7, %31 : vector<8x128xi32>
    %33 = arith.ori %30, %32 : vector<8x128xi1>
    %34 = arith.extui %33 : vector<8x128xi1> to vector<8x128xi32>
    %35 = arith.sitofp %34 : vector<8x128xi32> to vector<8x128xf32>
    %36 = arith.addf %22, %35 : vector<8x128xf32>
    %37 = vector.extract_strided_slice %0 {offsets = [0, 2], sizes = [8, 1], strides = [1, 1]} : vector<8x5xi32> to vector<8x1xi32>
    %38 = vector.extract_strided_slice %1 {offsets = [0, 2], sizes = [8, 1], strides = [1, 1]} : vector<8x5xi32> to vector<8x1xi32>
    %39 = vector.extract_strided_slice %2 {offsets = [0, 2], sizes = [8, 1], strides = [1, 1]} : vector<8x5xi32> to vector<8x1xi32>
    %40 = vector.broadcast %37 : vector<8x1xi32> to vector<8x128xi32>
    %41 = arith.cmpi eq, %3, %40 : vector<8x128xi32>
    %42 = vector.broadcast %38 : vector<8x1xi32> to vector<8x128xi32>
    %43 = arith.cmpi eq, %5, %42 : vector<8x128xi32>
    %44 = arith.ori %41, %43 : vector<8x128xi1>
    %45 = vector.broadcast %39 : vector<8x1xi32> to vector<8x128xi32>
    %46 = arith.cmpi eq, %7, %45 : vector<8x128xi32>
    %47 = arith.ori %44, %46 : vector<8x128xi1>
    %48 = arith.extui %47 : vector<8x128xi1> to vector<8x128xi32>
    %49 = arith.sitofp %48 : vector<8x128xi32> to vector<8x128xf32>
    %50 = arith.addf %36, %49 : vector<8x128xf32>
    %51 = vector.extract_strided_slice %0 {offsets = [0, 3], sizes = [8, 1], strides = [1, 1]} : vector<8x5xi32> to vector<8x1xi32>
    %52 = vector.extract_strided_slice %1 {offsets = [0, 3], sizes = [8, 1], strides = [1, 1]} : vector<8x5xi32> to vector<8x1xi32>
    %53 = vector.extract_strided_slice %2 {offsets = [0, 3], sizes = [8, 1], strides = [1, 1]} : vector<8x5xi32> to vector<8x1xi32>
    %54 = vector.broadcast %51 : vector<8x1xi32> to vector<8x128xi32>
    %55 = arith.cmpi eq, %3, %54 : vector<8x128xi32>
    %56 = vector.broadcast %52 : vector<8x1xi32> to vector<8x128xi32>
    %57 = arith.cmpi eq, %5, %56 : vector<8x128xi32>
    %58 = arith.ori %55, %57 : vector<8x128xi1>
    %59 = vector.broadcast %53 : vector<8x1xi32> to vector<8x128xi32>
    %60 = arith.cmpi eq, %7, %59 : vector<8x128xi32>
    %61 = arith.ori %58, %60 : vector<8x128xi1>
    %62 = arith.extui %61 : vector<8x128xi1> to vector<8x128xi32>
    %63 = arith.sitofp %62 : vector<8x128xi32> to vector<8x128xf32>
    %64 = arith.addf %50, %63 : vector<8x128xf32>
    %65 = vector.extract_strided_slice %0 {offsets = [0, 4], sizes = [8, 1], strides = [1, 1]} : vector<8x5xi32> to vector<8x1xi32>
    %66 = vector.extract_strided_slice %1 {offsets = [0, 4], sizes = [8, 1], strides = [1, 1]} : vector<8x5xi32> to vector<8x1xi32>
    %67 = vector.extract_strided_slice %2 {offsets = [0, 4], sizes = [8, 1], strides = [1, 1]} : vector<8x5xi32> to vector<8x1xi32>
    %68 = vector.broadcast %65 : vector<8x1xi32> to vector<8x128xi32>
    %69 = arith.cmpi eq, %3, %68 : vector<8x128xi32>
    %70 = vector.broadcast %66 : vector<8x1xi32> to vector<8x128xi32>
    %71 = arith.cmpi eq, %5, %70 : vector<8x128xi32>
    %72 = arith.ori %69, %71 : vector<8x128xi1>
    %73 = vector.broadcast %67 : vector<8x1xi32> to vector<8x128xi32>
    %74 = arith.cmpi eq, %7, %73 : vector<8x128xi32>
    %75 = arith.ori %72, %74 : vector<8x128xi1>
    %76 = arith.extui %75 : vector<8x128xi1> to vector<8x128xi32>
    %77 = arith.sitofp %76 : vector<8x128xi32> to vector<8x128xf32>
    %78 = arith.addf %64, %77 : vector<8x128xf32>
    %c0_5 = arith.constant 0 : index
    %c0_6 = arith.constant 0 : index
    %79 = vector.load %arg4[%c0_5, %c0_6] : memref<128x32xf32, #tpu.memory_space<vmem>>, vector<128x32xf32>
    %cst_7 = arith.constant dense<0.000000e+00> : vector<8x32xf32>
    %80 = tpu.matmul %78, %79, %cst_7 {dimension_numbers = #tpu.dot_dimension_numbers<[1], [0], [0], [1], [0, 0, 1, 1], [], []>} : vector<8x128xf32>, vector<128x32xf32>, vector<8x32xf32> -> vector<8x32xf32>
    %c0_8 = arith.constant 0 : index
    %c0_9 = arith.constant 0 : index
    %81 = vector.load %arg5[%c0_8, %c0_9] : memref<8x32xf32, #tpu.memory_space<vmem>>, vector<8x32xf32>
    tpu.vector_store %arg5[%c0_8, %c0_9], %80 {strides = array<i32>} : memref<8x32xf32, #tpu.memory_space<vmem>>, vector<8x32xf32>,
    return
  }
  func.func @transform_0(%arg0: i32) -> (i32, i32) {
    %c0_i32 = arith.constant 0 : i32
    %c0_i32_0 = arith.constant 0 : i32
    return %arg0, %c0_i32 : i32, i32
  }
  func.func @transform_1(%arg0: i32) -> (i32, i32) {
    %c0_i32 = arith.constant 0 : i32
    %c0_i32_0 = arith.constant 0 : i32
    return %arg0, %c0_i32 : i32, i32
  }
  func.func @transform_2(%arg0: i32) -> (i32, i32) {
    %c0_i32 = arith.constant 0 : i32
    %c0_i32_0 = arith.constant 0 : i32
    return %arg0, %c0_i32 : i32, i32
  }
  func.func @transform_3(%arg0: i32) -> (i32, i32) {
    %c0_i32 = arith.constant 0 : i32
    %c0_i32_0 = arith.constant 0 : i32
    %c0_i32_1 = arith.constant 0 : i32
    return %c0_i32, %c0_i32_0 : i32, i32
  }
  func.func @transform_4(%arg0: i32) -> (i32, i32) {
    %c0_i32 = arith.constant 0 : i32
    %c0_i32_0 = arith.constant 0 : i32
    return %arg0, %c0_i32 : i32, i32
  }
}

</mosaic_0001>

<bundles_post_ra>
// kernel: tpu_custom_call.1
= control target key start
LH: loop header
LB: loop body
LE: loop exit
PB: predicated region body
PF: predicated region fallthrough
CT: control target
= control target key end

     0   :  { %v336_v1 = vmov 1   ;;  %v337_v2 = vmov 0   ;;  %s439_s0 = inlined_call_operand.vmem [shape: s32[8,5], index: 0, kind: input, shape index: {}]   ;;  %s440_s1 = inlined_call_operand.vmem [shape: s32[8,5], index: 1, kind: input, shape index: {}]   ;;  %s441_s2 = inlined_call_operand.vmem [shape: s32[8,5], index: 2, kind: input, shape index: {}]   ;;  %s442_s3 = inlined_call_operand.vmem [shape: f32[128,32], index: 3, kind: input, shape index: {}]   ;;  %s443_s4 = inlined_call_operand.hbm [shape: f32[8,32], index: 4, kind: output, shape index: {}]  }
   0x1   :  { %v18_v0 = vld [vmem:[%s439_s0] sm:$0xff]  ;;  %305 = vset.pattern.permute.xlu1 %v336_v1  ;;  %304 = vset.pattern.permute.xlu0 %v337_v2 }
   0x2   :  { %9 = vsyncpa [#allocation3], 0  ;;  %43 = vperm.xlu1 %305, %v18_v0   ;;  %26 = vperm.xlu0 %304, %v18_v0   ;;  %v19_v3 = vld [vmem:[%s440_s1] sm:$0xff]  ;;  %v111_v6 = vld [vmem:[%s442_s3 + $0x8] sm:$0xff]  ;;  %v338_v8 = vmov 0.0|0.0   ;;  %v339_v11 = vmov 2   ;;  %v21_v39 = vlaneseq }
   0x3   :  { %v20_v4 = vld [vmem:[%s441_s2] sm:$0xff]  ;;  %271 = vmatprep.subr.bf16.mxu0 %v338_v8  ;;  %v112_v9 = vld [vmem:[%s442_s3 + $0x10] sm:$0xff]  ;;  %v113_v10 = vld [vmem:[%s442_s3 + $0x18] sm:$0xff]  ;;  %v340_v16 = vmov 3   ;;  %v341_v20 = vmov 4   ;;  %vm342_vm0 = vmmov 0  }
   0x4   :  { %v110_v5 = vld [vmem:[%s442_s3] sm:$0xff]  ;;  %v275_v12 = vpack.c.bf16 %v113_v10, %v112_v9  ;;  %v115_v14 = vld [vmem:[%s442_s3 + $0x28] sm:$0xff]  ;;  %v116_v17 = vld [vmem:[%s442_s3 + $0x30] sm:$0xff]  ;;  %v343_v33 = vmov 0.0   ;;  %v22_v42 = vand.u32 127, %v21_v39 }
   0x5   :  { %v272_v7 = vpack.c.bf16 %v111_v6, %v110_v5  ;;  %v114_v13 = vld [vmem:[%s442_s3 + $0x20] sm:$0xff]  ;;  %v117_v18 = vld [vmem:[%s442_s3 + $0x38] sm:$0xff]  ;;  %v119_v22 = vld [vmem:[%s442_s3 + $0x48] sm:$0xff]  ;;  %268 = vmatprep.mubr.msk.f32.mxu0 %vm342_vm0, %v343_v33 }
   0x6   :  { %47 = vperm.xlu1 %305, %v19_v3   ;;  %30 = vperm.xlu0 %304, %v19_v3   ;;  %v278_v15 = vpack.c.bf16 %v115_v14, %v114_v13  ;;  %v281_v19 = vpack.c.bf16 %v117_v18, %v116_v17  ;;  %v118_v21 = vld [vmem:[%s442_s3 + $0x40] sm:$0xff]  ;;  %v120_v24 = vld [vmem:[%s442_s3 + $0x50] sm:$0xff]  ;;  %v121_v25 = vld [vmem:[%s442_s3 + $0x58] sm:$0xff]  ;;  %v212_v44 = vadd.s32 4294967282, %v22_v42  ;;  %v213_v45 = vadd.s32 4294967277, %v22_v42 }
   0x7   :  { %273 = vmatpush3.bf16.msra.mxu0 %v272_v7  ;;  %v284_v23 = vpack.c.bf16 %v119_v22, %v118_v21  ;;  %v287_v26 = vpack.c.bf16 %v121_v25, %v120_v24  ;;  %v122_v27 = vld [vmem:[%s442_s3 + $0x60] sm:$0xff]  ;;  %v123_v28 = vld [vmem:[%s442_s3 + $0x68] sm:$0xff]  ;;  %v124_v30 = vld [vmem:[%s442_s3 + $0x70] sm:$0xff] }
   0x8   :  { %274 = vmatprep.subr.bf16.mxu0 %v338_v8  ;;  %v290_v29 = vpack.c.bf16 %v123_v28, %v122_v27  ;;  %v125_v31 = vld [vmem:[%s442_s3 + $0x78] sm:$0xff]  ;;  %s344_s3 = smov [#allocation2]  }
   0x9   :  { %v293_v32 = vpack.c.bf16 %v125_v31, %v124_v30  ;;  %s204_s23 = sshll.u32 %s344_s3, 4  ;;  %s205_s23 = int_to_ptr.vmem [resolvable:$true] %s204_s23 }
   0xa   :  { %52 = vperm.xlu1 %305, %v20_v4   ;;  %35 = vperm.xlu0 %304, %v20_v4   ;;  %s312_s1 = scalar_lea.vmem %s205_s23, 128  ;;  %p317_p1 = scmp.lt.s32.totalorder %s205_s23, %s205_s23 }
   0xb   :  { %276 = vmatpush3.bf16.msra.mxu0 %v275_v12  ;;  %p313_p0 = scmp.ne.s32.totalorder %s205_s23, %s312_s1  ;;  %p318_p2 = scmp.lt.s32.totalorder %s312_s1, %s312_s1 }
   0xc   :  { %277 = vmatprep.subr.bf16.mxu0 %v338_v8 }
   0xd   :  { %p319_p3 = por %p318_p2, %p317_p1 }
   0xe   :  { %307 = vset.pattern.permute.xlu1 %v339_v11  ;;  %306 = vset.pattern.permute.xlu0 %v339_v11 }
   0xf   :  { %64 = vperm.xlu1 %307, %v19_v3   ;;  %60 = vperm.xlu0 %306, %v18_v0   ;;  %p320_p4 = pnand %p319_p3, %p313_p0 }
  0x10   :  { %279 = vmatpush3.bf16.msra.mxu0 %v278_v15 }
  0x11   :  { %280 = vmatprep.subr.bf16.mxu0 %v338_v8 }
  0x13   :  { %69 = vperm.xlu1 %307, %v20_v4   ;;  %308 = vset.pattern.permute.xlu0 %v340_v16 }
  0x14   :  { %77 = vperm.xlu0 %308, %v18_v0   ;;  %282 = vmatpush3.bf16.msra.mxu0 %v281_v19 }
  0x15   :  { %283 = vmatprep.subr.bf16.mxu0 %v338_v8 }
  0x17   :  { %309 = vset.pattern.permute.xlu1 %v340_v16 }
  0x18   :  { %81 = vperm.xlu1 %309, %v19_v3   ;;  %310 = vset.pattern.permute.xlu0 %v341_v20 }
  0x19   :  { %94 = vperm.xlu0 %310, %v18_v0   ;;  %285 = vmatpush3.bf16.msra.mxu0 %v284_v23 }
  0x1a   :  { %286 = vmatprep.subr.bf16.mxu0 %v338_v8 }
  0x1c   :  { %86 = vperm.xlu1 %309, %v20_v4  }
  0x1d   :  { %288 = vmatpush3.bf16.msra.mxu0 %v287_v26 }
  0x1e   :  { %289 = vmatprep.subr.bf16.mxu0 %v338_v8 }
  0x20   :  { %311 = vset.pattern.permute.xlu1 %v341_v20 }
  0x21   :  { %98 = vperm.xlu1 %311, %v19_v3   ;;  %291 = vmatpush3.bf16.msra.mxu0 %v290_v29 }
  0x22   :  { %292 = vmatprep.subr.bf16.mxu0 %v338_v8 }
  0x25   :  { %103 = vperm.xlu1 %311, %v20_v4   ;;  %294 = vmatpush3.bf16.msra.mxu0 %v293_v32 }
  0x81   :  { %v44_v34 = vpop.permute.xlu1 %43  ;;  %v27_v35 = vpop.permute.xlu0 %26 }
  0x82   :  { %vm28_vm1 = vcmp.eq.s32.totalorder %v22_v42, %v27_v35  ;;  %vm45_vm5 = vcmp.eq.s32.totalorder %v22_v42, %v44_v34 }
  0x85   :  { %v48_v36 = vpop.permute.xlu1 %47  ;;  %v31_v37 = vpop.permute.xlu0 %30 }
  0x86   :  { %vm32_vm2 = vcmp.eq.s32.totalorder %v212_v44, %v31_v37  ;;  %vm49_vm3 = vcmp.eq.s32.totalorder %v212_v44, %v48_v36 }
  0x87   :  { %vm33_vm6 = vmor %vm28_vm1, %vm32_vm2 }
  0x88   :  { %vm50_vm8 = vmor %vm45_vm5, %vm49_vm3 }
  0x89   :  { %v53_v38 = vpop.permute.xlu1 %52  ;;  %v36_v41 = vpop.permute.xlu0 %35 }
  0x8a   :  { %vm54_vm4 = vcmp.eq.s32.totalorder %v213_v45, %v53_v38  ;;  %vm37_vm7 = vcmp.eq.s32.totalorder %v213_v45, %v36_v41 }
  0x8b   :  { %vm55_vm11 = vmor %vm50_vm8, %vm54_vm4 }
  0x8c   :  { %vm38_vm13 = vmor %vm33_vm6, %vm37_vm7  ;;  %v215_v50 = vsel %vm55_vm11, 1.0, %v343_v33 }
  0x8d   :  { %v214_v51 = vsel %vm38_vm13, 1.0, %v343_v33 }
  0x8e   :  { %v65_v40 = vpop.permute.xlu1 %64  ;;  %v61_v46 = vpop.permute.xlu0 %60  ;;  %v58_v55 = vadd.f32 %v215_v50, %v214_v51 }
  0x8f   :  { %vm66_vm9 = vcmp.eq.s32.totalorder %v212_v44, %v65_v40  ;;  %vm62_vm10 = vcmp.eq.s32.totalorder %v22_v42, %v61_v46 }
  0x90   :  { %vm67_vm0 = vmor %vm62_vm10, %vm66_vm9  ;;  %vm196_vm10 = vcmask 261120  }
  0x92   :  { %v70_v43 = vpop.permute.xlu1 %69 }
  0x93   :  { %v78_v48 = vpop.permute.xlu0 %77  ;;  %vm71_vm12 = vcmp.eq.s32.totalorder %v213_v45, %v70_v43 }
  0x94   :  { %vm79_vm15 = vcmp.eq.s32.totalorder %v22_v42, %v78_v48  ;;  %vm72_vm2 = vmor %vm67_vm0, %vm71_vm12 }
  0x95   :  { %v216_v54 = vsel %vm72_vm2, 1.0, %v343_v33 }
  0x96   :  { %v75_v57 = vadd.f32 %v216_v54, %v58_v55 }
  0x97   :  { %v82_v47 = vpop.permute.xlu1 %81 }
  0x98   :  { %vm83_vm14 = vcmp.eq.s32.totalorder %v212_v44, %v82_v47  ;;  %v95_v52 = vpop.permute.xlu0 %94 }
  0x99   :  { %vm84_vm3 = vmor %vm79_vm15, %vm83_vm14  ;;  %vm96_vm8 = vcmp.eq.s32.totalorder %v22_v42, %v95_v52 }
  0x9b   :  { %v87_v49 = vpop.permute.xlu1 %86 }
  0x9c   :  { %vm88_vm1 = vcmp.eq.s32.totalorder %v213_v45, %v87_v49 }
  0x9d   :  { %vm89_vm5 = vmor %vm84_vm3, %vm88_vm1 }
  0x9e   :  { %v217_v56 = vsel %vm89_vm5, 1.0, %v343_v33 }
  0x9f   :  { %v92_v59 = vadd.f32 %v217_v56, %v75_v57 }
  0xa0   :  { %v99_v53 = vpop.permute.xlu1 %98 }
  0xa1   :  { %vm100_vm4 = vcmp.eq.s32.totalorder %v212_v44, %v99_v53 }
  0xa2   :  { %vm101_vm6 = vmor %vm96_vm8, %vm100_vm4 }
  0xa4   :  { %v104_v58 = vpop.permute.xlu1 %103 }
  0xa5   :  { %vm105_vm7 = vcmp.eq.s32.totalorder %v213_v45, %v104_v58 }
  0xa6   :  { %vm106_vm9 = vmor %vm101_vm6, %vm105_vm7 }
  0xa7   :  { %v218_v60 = vsel %vm106_vm9, 1.0, %v343_v33 }
  0xa8   :  { %v109_v61 = vadd.f32 %v218_v60, %v92_v59 }
  0xaa   :  { %269 = vmatmul.mubr.f32.vlgmr.msra.gmra.mrb[0].mxu0 %v109_v61 }
 0x17d   :  { %v192_v62 = vpop.f32.mrb[0].mxu0 }
 0x17e   :  { %197 = vst.msk [vmem:[#allocation2] sm:$0xff] %vm196_vm10, %v192_v62  ;;  %v270_v63 = vpop.f32.mrb[1].mxu0 }
 0x17f   :  { %323 = shalt.err (!%p320_p4)
}
 0x180   :  { %s324_s25 = scalar_lea.hbm %s443_s4, 128 }
 0x181   :  { %p325_p5 = scmp.ne.s32.totalorder %s443_s4, %s324_s25  ;;  %p328_p6 = scmp.lt.u32.totalorder %s324_s25, %s443_s4 }
 0x183   :  { %p330_p7 = pnand %p328_p6, %p325_p5 }
 0x185   :  { %333 = shalt.err (!%p330_p7)
}
 0x186   :  { %207 = dma.vmem_to_hbm [thread:$0]  %s205_s23, 128, %s443_s4, [#allocation3]  }
 0x187   :  { %334 = dma.done.wait [#allocation3], 128  }
 0x188   :  { %335 = vsyncadd [#allocation3], 4294967168 }
 0x189   :  { %211 = vsyncpa [#allocation3], 1 }

</bundles_post_ra>
